<compile_context>
chip_gen: v7x
topology: tpu7x:2x2x1
jax: 0.10.0
libtpu: 0.0.40
codegen_flags: <defaults>
</compile_context>

<pallas_src>
import jax
import jax.numpy as jnp
import numpy as np
from jax.experimental import pallas as pl
from jax.experimental.pallas import tpu as pltpu

BN_EPS = 1e-5
TM_TARGET = 2048                  # target lanes per tile (review: 2048-4096)
GEMM_DTYPE = jnp.bfloat16         # staging dtype for the conv1/skip patch GEMM


def _cdiv(a, b):
    return -(-a // b)


# ------------------------------ Pallas kernel ------------------------------
def _make_fused_kernel(tap_offsets, cout, tile_m, halo):
    """Fused conv1(+BN+ReLU) & conv_skip(+BN) & conv2(+BN+ReLU) + residual.

    Per grid step (all lane-dense along the flattened-voxel axis M):
      p1_ref : [27*Cin, TM]    bf16  stride-s im2col patch tile (shared)
      w1s_ref: [2*Cout, 27*Cin] bf16 [conv1 ; conv_skip] BN-folded weights
      b1s_ref: [2*Cout, 1]     f32   stacked folded biases
      w2_ref : [Cout, 27*Cout] f32   conv2 BN-folded weights
      b2_ref : [Cout, 1]       f32
      msk_ref: [32, TM]        f32   rows 0..26 = per-tap spatial validity
      o_ref  : [Cout, TM]      f32   final output tile
    """
    def kernel(p1_ref, w1s_ref, b1s_ref, w2_ref, b2_ref, msk_ref, o_ref):
        # -- conv1 + conv_skip: one stacked MXU dot over the shared patches --
        y = jnp.dot(w1s_ref[...], p1_ref[...],
                    preferred_element_type=jnp.float32) + b1s_ref[...]
        h = jnp.maximum(y[:cout, :], 0.0)        # main path, stays on-chip
        skip = y[cout:, :]                       # residual branch (no ReLU)

        # -- conv2 as an implicit GEMM over the VMEM-resident h --------------
        # Zero halo covers shifted reads past the tile edges; interior invalid
        # neighbours (sample / row / slice boundaries of the flattened layout)
        # are zeroed via the precomputed per-tap masks (NaN-safe select).
        zpad = jnp.zeros((cout, halo), jnp.float32)
        hx = jnp.concatenate([zpad, h, zpad], axis=1)     # [Cout, TM + 2*halo]
        cols = []
        for t, off in enumerate(tap_offsets):
            src = hx[:, halo + off: halo + off + tile_m]  # shifted lane slice
            if off != 0:
                src = jnp.where(msk_ref[t:t + 1, :] != 0.0, src, 0.0)
            cols.append(src)
        p2 = jnp.concatenate(cols, axis=0)                # [27*Cout, TM] (VMEM only)
        y2 = jnp.dot(w2_ref[...], p2, preferred_element_type=jnp.float32)
        o_ref[...] = (jnp.maximum(y2 + b2_ref[...], 0.0) + skip).astype(o_ref.dtype)

    return kernel


# ------------------------------ glue (JAX) ---------------------------------
def _im2col_cf(x_ncdhw, stride, dtype):
    """Channel-first 3x3x3 / pad-1 im2col: [N,C,D,H,W] -> [27*C, N*Do*Ho*Wo]."""
    N, C, D, H, W = x_ncdhw.shape
    xp = jnp.pad(x_ncdhw, ((0, 0), (0, 0), (1, 1), (1, 1), (1, 1)))
    Do = (D - 1) // stride + 1
    Ho = (H - 1) // stride + 1
    Wo = (W - 1) // stride + 1
    cols = []
    for kd in range(3):
        for kh in range(3):
            for kw in range(3):
                sl = xp[:, :,
                        kd:kd + stride * (Do - 1) + 1:stride,
                        kh:kh + stride * (Ho - 1) + 1:stride,
                        kw:kw + stride * (Wo - 1) + 1:stride]
                cols.append(jnp.moveaxis(sl, 1, 0).reshape(C, -1))   # [C, N*M_s]
    return jnp.concatenate(cols, axis=0).astype(dtype), (Do, Ho, Wo)


def _fold_bn(w, b, g, be, m, v, dtype):
    """Fold eval-mode BN into conv weight rows / bias.  w: [Cout,Cin,3,3,3]."""
    Cout = w.shape[0]
    scale = (g * jax.lax.rsqrt(v + BN_EPS)).astype(jnp.float32)       # [Cout]
    wmat = jnp.transpose(w, (0, 2, 3, 4, 1)).reshape(Cout, -1)        # [Cout,K]
    wmat = (wmat.astype(jnp.float32) * scale[:, None]).astype(dtype)
    bias = (scale * (b - m) + be).reshape(Cout, 1).astype(jnp.float32)
    return wmat, bias


def _conv2_masks_and_offsets(Do, Ho, Wo, spt):
    """Per-tap validity masks [32, spt*M_s] and flattened-lane tap offsets."""
    HW, W = Ho * Wo, Wo
    m_s = Do * HW
    loc = np.arange(spt * m_s) % m_s
    od, oh, ow = loc // HW, (loc // W) % Ho, loc % W
    masks = np.zeros((32, spt * m_s), np.float32)
    offsets = []
    t = 0
    for kd in range(3):
        for kh in range(3):
            for kw in range(3):
                v = np.ones(spt * m_s, bool)
                if kd == 0: v &= od > 0
                if kd == 2: v &= od < Do - 1
                if kh == 0: v &= oh > 0
                if kh == 2: v &= oh < Ho - 1
                if kw == 0: v &= ow > 0
                if kw == 2: v &= ow < Wo - 1
                masks[t] = v
                offsets.append((kd - 1) * HW + (kh - 1) * W + (kw - 1))
                t += 1
    return jnp.asarray(masks), tuple(offsets)


def _pick_samples_per_tile(n, m_s):
    """Whole samples per tile: ~TM_TARGET lanes, >=2 grid steps when possible,
    and lane-tiling-legal (TM % 128 == 0 or the tile covers the whole array)."""
    spt = max(1, min(n, TM_TARGET // max(m_s, 1)))
    if n >= 2 and _cdiv(n, spt) < 2:
        spt = _cdiv(n, 2)                # keep both v7x TensorCores busy
    while spt < n and (spt * m_s) % 128 != 0:
        spt += 1
    if (spt * m_s) % 128 != 0:
        spt = n                          # full-extent block is always legal
    return spt


def double_residual_conv(x_ncdhw, params, stride=2):
    """Pallas implementation of DoubleResidualConv.forward (NCDHW in/out)."""
    N, Cin, D, H, W = x_ncdhw.shape
    Cout = params["w1"].shape[0]
    Do = (D - 1) // stride + 1
    Ho = (H - 1) // stride + 1
    Wo = (W - 1) // stride + 1
    m_s = Do * Ho * Wo                              # output voxels per sample

    spt = _pick_samples_per_tile(N, m_s)
    grid_n = _cdiv(N, spt)
    n_pad = grid_n * spt
    tile_m = spt * m_s

    x = x_ncdhw
    if n_pad != N:                                  # pad the SMALL input only
        x = jnp.pad(x, ((0, n_pad - N),) + ((0, 0),) * 4)

    # shared stride-s patch stream for conv1 + conv_skip
    p1, _ = _im2col_cf(x, stride, GEMM_DTYPE)       # [27*Cin, M_total]
    K1, M_total = p1.shape

    # fold eval-mode BN; stack conv1 & conv_skip into one 16-row LHS
    w1m, b1v = _fold_bn(params["w1"], params["b1"], params["g1"],
                        params["be1"], params["m1"], params["v1"], GEMM_DTYPE)
    wsm, bsv = _fold_bn(params["ws"], params["bs"], params["gs"],
                        params["bes"], params["ms"], params["vs"], GEMM_DTYPE)
    w2m, b2v = _fold_bn(params["w2"], params["b2"], params["g2"],
                        params["be2"], params["m2"], params["v2"], jnp.float32)
    w1s = jnp.concatenate([w1m, wsm], axis=0)       # [2*Cout, K1]
    b1s = jnp.concatenate([b1v, bsv], axis=0)       # [2*Cout, 1]

    masks, tap_offs = _conv2_masks_and_offsets(Do, Ho, Wo, spt)
    halo = Ho * Wo + Wo + 1                         # max |flattened tap offset|

    out = pl.pallas_call(
        _make_fused_kernel(tap_offs, Cout, tile_m, halo),
        out_shape=jax.ShapeDtypeStruct((Cout, M_total), jnp.float32),
        grid=(grid_n,),
        in_specs=[
            pl.BlockSpec((K1, tile_m), lambda i: (0, i)),        # patch stream
            pl.BlockSpec((2 * Cout, K1), lambda i: (0, 0)),      # w1 ; w_skip
            pl.BlockSpec((2 * Cout, 1), lambda i: (0, 0)),       # b1 ; b_skip
            pl.BlockSpec((Cout, 27 * Cout), lambda i: (0, 0)),   # w2
            pl.BlockSpec((Cout, 1), lambda i: (0, 0)),           # b2
            pl.BlockSpec((32, tile_m), lambda i: (0, 0)),        # tap masks
        ],
        out_specs=pl.BlockSpec((Cout, tile_m), lambda i: (0, i)),
        compiler_params=pltpu.CompilerParams(
            dimension_semantics=("parallel",),
            vmem_limit_bytes=32 * 1024 * 1024),
    )(p1, w1s, b1s, w2m, b2v, masks)

    out = out[:, :N * m_s].reshape(Cout, N, Do, Ho, Wo)
    return jnp.transpose(out, (1, 0, 2, 3, 4)).astype(x_ncdhw.dtype)  # NCDHW


# --------------------------- pure-JAX reference ----------------------------
def _ref_forward(x, p, stride=2):
    def conv(x, w, b, s):
        y = jax.lax.conv_general_dilated(
            x, w, (s, s, s), [(1, 1)] * 3,
            dimension_numbers=("NCDHW", "OIDHW", "NCDHW"))
        return y + b[None, :, None, None, None]

    def bn(y, g, be, m, v):
        sh = (1, -1, 1, 1, 1)
        return (y - m.reshape(sh)) * (g * jax.lax.rsqrt(v + BN_EPS)).reshape(sh) \
            + be.reshape(sh)

    h = jax.nn.relu(bn(conv(x, p["w1"], p["b1"], stride),
                       p["g1"], p["be1"], p["m1"], p["v1"]))
    h = jax.nn.relu(bn(conv(h, p["w2"], p["b2"], 1),
                       p["g2"], p["be2"], p["m2"], p["v2"]))
    sk = bn(conv(x, p["ws"], p["bs"], stride),
            p["gs"], p["bes"], p["ms"], p["vs"])
    return h + sk


# --------------------------------- main -------------------------------------
if __name__ == "__main__":
    Cin, Cout, N, S = 4, 8, 2, 8
    key = jax.random.PRNGKey(0)
    ks = jax.random.split(key, 32)

    def conv_bn_params(i, cin):
        return dict(
            w=jax.random.normal(ks[i], (Cout, cin, 3, 3, 3), jnp.float32) * 0.1,
            b=jax.random.normal(ks[i + 1], (Cout,), jnp.float32) * 0.1,
            g=1.0 + 0.1 * jax.random.normal(ks[i + 2], (Cout,), jnp.float32),
            be=0.1 * jax.random.normal(ks[i + 3], (Cout,), jnp.float32),
            m=0.1 * jax.random.normal(ks[i + 4], (Cout,), jnp.float32),
            v=0.5 + jax.random.uniform(ks[i + 5], (Cout,), jnp.float32),
        )

    pA = conv_bn_params(0, Cin)    # conv_block[0]: Cin -> Cout, stride 2
    pB = conv_bn_params(8, Cout)   # conv_block[3]: Cout -> Cout, stride 1
    pC = conv_bn_params(16, Cin)   # conv_skip    : Cin -> Cout, stride 2

    params = dict(
        w1=pA["w"], b1=pA["b"], g1=pA["g"], be1=pA["be"], m1=pA["m"], v1=pA["v"],
        w2=pB["w"], b2=pB["b"], g2=pB["g"], be2=pB["be"], m2=pB["m"], v2=pB["v"],
        ws=pC["w"], bs=pC["b"], gs=pC["g"], bes=pC["be"], ms=pC["m"], vs=pC["v"],
    )

    x = jax.random.normal(ks[30], (N, Cin, S, S, S), jnp.float32)  # NCDHW

    fwd = jax.jit(double_residual_conv, static_argnames="stride")
    out = jax.block_until_ready(fwd(x, params, stride=2))
    ref = jax.block_until_ready(_ref_forward(x, params, stride=2))

    assert out.shape == (N, Cout, S // 2, S // 2, S // 2), out.shape
    # Tolerance: strict for f32-staged GEMM; loose for the bf16-staged
    # conv1/skip operands (conv2 already accumulates in f32 from VMEM).
    tol = 1e-4 if GEMM_DTYPE == jnp.float32 else 1e-1
    np.testing.assert_allclose(np.asarray(out), np.asarray(ref),
                               rtol=tol, atol=tol)
    print("KERNEL_OK")
</pallas_src>

<mosaic_0001>
module attributes {stable_mosaic.version = 11 : i64} {
  func.func @kernel(%arg0: i32, %arg1: memref<108x128xbf16, #tpu.memory_space<vmem>>, %arg2: memref<16x108xbf16, #tpu.memory_space<vmem>>, %arg3: memref<16x1xf32, #tpu.memory_space<vmem>>, %arg4: memref<8x216xf32, #tpu.memory_space<vmem>>, %arg5: memref<8x1xf32, #tpu.memory_space<vmem>>, %arg6: memref<32x128xf32, #tpu.memory_space<vmem>>, %arg7: memref<8x128xf32, #tpu.memory_space<vmem>>) attributes {dimension_semantics = [#tpu.dimension_semantics<parallel>], iteration_bounds = array<i64: 1>, scalar_prefetch = 0 : i64, scratch_operands = 0 : i64, tpu.core_type = #tpu.core_type<tc>, window_params = [{transform_indices = @transform_0, window_bounds = array<i64: 108, 128>}, {pipeline_mode = #tpu.pipeline_mode<synchronous>, transform_indices = @transform_1, window_bounds = array<i64: 16, 108>}, {pipeline_mode = #tpu.pipeline_mode<synchronous>, transform_indices = @transform_2, window_bounds = array<i64: 16, 1>}, {pipeline_mode = #tpu.pipeline_mode<synchronous>, transform_indices = @transform_3, window_bounds = array<i64: 8, 216>}, {pipeline_mode = #tpu.pipeline_mode<synchronous>, transform_indices = @transform_4, window_bounds = array<i64: 8, 1>}, {pipeline_mode = #tpu.pipeline_mode<synchronous>, transform_indices = @transform_5, window_bounds = array<i64: 32, 128>}, {transform_indices = @transform_6, window_bounds = array<i64: 8, 128>}]} {
    %c0 = arith.constant 0 : index
    %c0_0 = arith.constant 0 : index
    %0 = vector.load %arg2[%c0, %c0_0] : memref<16x108xbf16, #tpu.memory_space<vmem>>, vector<16x108xbf16>
    %c0_1 = arith.constant 0 : index
    %c0_2 = arith.constant 0 : index
    %1 = vector.load %arg1[%c0_1, %c0_2] : memref<108x128xbf16, #tpu.memory_space<vmem>>, vector<108x128xbf16>
    %cst = arith.constant dense<0.000000e+00> : vector<16x128xf32>
    %2 = tpu.matmul %0, %1, %cst {dimension_numbers = #tpu.dot_dimension_numbers<[1], [0], [0], [1], [0, 0, 1, 1], [], []>} : vector<16x108xbf16>, vector<108x128xbf16>, vector<16x128xf32> -> vector<16x128xf32>
    %c0_3 = arith.constant 0 : index
    %c0_4 = arith.constant 0 : index
    %3 = vector.load %arg3[%c0_3, %c0_4] : memref<16x1xf32, #tpu.memory_space<vmem>>, vector<16x1xf32>
    %4 = vector.broadcast %3 : vector<16x1xf32> to vector<16x128xf32>
    %5 = arith.addf %2, %4 : vector<16x128xf32>
    %6 = vector.extract_strided_slice %5 {offsets = [0, 0], sizes = [8, 128], strides = [1, 1]} : vector<16x128xf32> to vector<8x128xf32>
    %cst_5 = arith.constant 0.000000e+00 : f32
    %7 = vector.broadcast %cst_5 : f32 to vector<8x128xf32>
    %8 = arith.maximumf %6, %7 : vector<8x128xf32>
    %9 = vector.extract_strided_slice %5 {offsets = [8, 0], sizes = [8, 128], strides = [1, 1]} : vector<16x128xf32> to vector<8x128xf32>
    %cst_6 = arith.constant 0.000000e+00 : f32
    %10 = vector.broadcast %cst_6 : f32 to vector<8x21xf32>
    %11 = tpu.concatenate %10, %8, %10 in 1 : vector<8x21xf32>, vector<8x128xf32>, vector<8x21xf32> -> vector<8x170xf32>
    %12 = vector.extract_strided_slice %11 {offsets = [0, 0], sizes = [8, 128], strides = [1, 1]} : vector<8x170xf32> to vector<8x128xf32>
    %c0_7 = arith.constant 0 : index
    %c0_8 = arith.constant 0 : index
    %13 = vector.load %arg6[%c0_7, %c0_8] : memref<32x128xf32, #tpu.memory_space<vmem>>, vector<1x128xf32>
    %cst_9 = arith.constant 0.000000e+00 : f32
    %14 = vector.broadcast %cst_9 : f32 to vector<1x128xf32>
    %15 = arith.cmpf one, %13, %14 : vector<1x128xf32>
    %cst_10 = arith.constant 0.000000e+00 : f32
    %16 = vector.shape_cast %15 : vector<1x128xi1> to vector<1x128xi1>
    %17 = vector.broadcast %16 : vector<1x128xi1> to vector<8x128xi1>
    %18 = vector.broadcast %cst_10 : f32 to vector<8x128xf32>
    %19 = arith.select %17, %12, %18 : vector<8x128xi1>, vector<8x128xf32>
    %20 = vector.extract_strided_slice %11 {offsets = [0, 1], sizes = [8, 128], strides = [1, 1]} : vector<8x170xf32> to vector<8x128xf32>
    %c1 = arith.constant 1 : index
    %c0_11 = arith.constant 0 : index
    %21 = vector.load %arg6[%c1, %c0_11] : memref<32x128xf32, #tpu.memory_space<vmem>>, vector<1x128xf32>
    %cst_12 = arith.constant 0.000000e+00 : f32
    %22 = vector.broadcast %cst_12 : f32 to vector<1x128xf32>
    %23 = arith.cmpf one, %21, %22 : vector<1x128xf32>
    %cst_13 = arith.constant 0.000000e+00 : f32
    %24 = vector.shape_cast %23 : vector<1x128xi1> to vector<1x128xi1>
    %25 = vector.broadcast %24 : vector<1x128xi1> to vector<8x128xi1>
    %26 = vector.broadcast %cst_13 : f32 to vector<8x128xf32>
    %27 = arith.select %25, %20, %26 : vector<8x128xi1>, vector<8x128xf32>
    %28 = vector.extract_strided_slice %11 {offsets = [0, 2], sizes = [8, 128], strides = [1, 1]} : vector<8x170xf32> to vector<8x128xf32>
    %c2 = arith.constant 2 : index
    %c0_14 = arith.constant 0 : index
    %29 = vector.load %arg6[%c2, %c0_14] : memref<32x128xf32, #tpu.memory_space<vmem>>, vector<1x128xf32>
    %cst_15 = arith.constant 0.000000e+00 : f32
    %30 = vector.broadcast %cst_15 : f32 to vector<1x128xf32>
    %31 = arith.cmpf one, %29, %30 : vector<1x128xf32>
    %cst_16 = arith.constant 0.000000e+00 : f32
    %32 = vector.shape_cast %31 : vector<1x128xi1> to vector<1x128xi1>
    %33 = vector.broadcast %32 : vector<1x128xi1> to vector<8x128xi1>
    %34 = vector.broadcast %cst_16 : f32 to vector<8x128xf32>
    %35 = arith.select %33, %28, %34 : vector<8x128xi1>, vector<8x128xf32>
    %36 = vector.extract_strided_slice %11 {offsets = [0, 4], sizes = [8, 128], strides = [1, 1]} : vector<8x170xf32> to vector<8x128xf32>
    %c3 = arith.constant 3 : index
    %c0_17 = arith.constant 0 : index
    %37 = vector.load %arg6[%c3, %c0_17] : memref<32x128xf32, #tpu.memory_space<vmem>>, vector<1x128xf32>
    %cst_18 = arith.constant 0.000000e+00 : f32
    %38 = vector.broadcast %cst_18 : f32 to vector<1x128xf32>
    %39 = arith.cmpf one, %37, %38 : vector<1x128xf32>
    %cst_19 = arith.constant 0.000000e+00 : f32
    %40 = vector.shape_cast %39 : vector<1x128xi1> to vector<1x128xi1>
    %41 = vector.broadcast %40 : vector<1x128xi1> to vector<8x128xi1>
    %42 = vector.broadcast %cst_19 : f32 to vector<8x128xf32>
    %43 = arith.select %41, %36, %42 : vector<8x128xi1>, vector<8x128xf32>
    %44 = vector.extract_strided_slice %11 {offsets = [0, 5], sizes = [8, 128], strides = [1, 1]} : vector<8x170xf32> to vector<8x128xf32>
    %c4 = arith.constant 4 : index
    %c0_20 = arith.constant 0 : index
    %45 = vector.load %arg6[%c4, %c0_20] : memref<32x128xf32, #tpu.memory_space<vmem>>, vector<1x128xf32>
    %cst_21 = arith.constant 0.000000e+00 : f32
    %46 = vector.broadcast %cst_21 : f32 to vector<1x128xf32>
    %47 = arith.cmpf one, %45, %46 : vector<1x128xf32>
    %cst_22 = arith.constant 0.000000e+00 : f32
    %48 = vector.shape_cast %47 : vector<1x128xi1> to vector<1x128xi1>
    %49 = vector.broadcast %48 : vector<1x128xi1> to vector<8x128xi1>
    %50 = vector.broadcast %cst_22 : f32 to vector<8x128xf32>
    %51 = arith.select %49, %44, %50 : vector<8x128xi1>, vector<8x128xf32>
    %52 = vector.extract_strided_slice %11 {offsets = [0, 6], sizes = [8, 128], strides = [1, 1]} : vector<8x170xf32> to vector<8x128xf32>
    %c5 = arith.constant 5 : index
    %c0_23 = arith.constant 0 : index
    %53 = vector.load %arg6[%c5, %c0_23] : memref<32x128xf32, #tpu.memory_space<vmem>>, vector<1x128xf32>
    %cst_24 = arith.constant 0.000000e+00 : f32
    %54 = vector.broadcast %cst_24 : f32 to vector<1x128xf32>
    %55 = arith.cmpf one, %53, %54 : vector<1x128xf32>
    %cst_25 = arith.constant 0.000000e+00 : f32
    %56 = vector.shape_cast %55 : vector<1x128xi1> to vector<1x128xi1>
    %57 = vector.broadcast %56 : vector<1x128xi1> to vector<8x128xi1>
    %58 = vector.broadcast %cst_25 : f32 to vector<8x128xf32>
    %59 = arith.select %57, %52, %58 : vector<8x128xi1>, vector<8x128xf32>
    %60 = vector.extract_strided_slice %11 {offsets = [0, 8], sizes = [8, 128], strides = [1, 1]} : vector<8x170xf32> to vector<8x128xf32>
    %c6 = arith.constant 6 : index
    %c0_26 = arith.constant 0 : index
    %61 = vector.load %arg6[%c6, %c0_26] : memref<32x128xf32, #tpu.memory_space<vmem>>, vector<1x128xf32>
    %cst_27 = arith.constant 0.000000e+00 : f32
    %62 = vector.broadcast %cst_27 : f32 to vector<1x128xf32>
    %63 = arith.cmpf one, %61, %62 : vector<1x128xf32>
    %cst_28 = arith.constant 0.000000e+00 : f32
    %64 = vector.shape_cast %63 : vector<1x128xi1> to vector<1x128xi1>
    %65 = vector.broadcast %64 : vector<1x128xi1> to vector<8x128xi1>
    %66 = vector.broadcast %cst_28 : f32 to vector<8x128xf32>
    %67 = arith.select %65, %60, %66 : vector<8x128xi1>, vector<8x128xf32>
    %68 = vector.extract_strided_slice %11 {offsets = [0, 9], sizes = [8, 128], strides = [1, 1]} : vector<8x170xf32> to vector<8x128xf32>
    %c7 = arith.constant 7 : index
    %c0_29 = arith.constant 0 : index
    %69 = vector.load %arg6[%c7, %c0_29] : memref<32x128xf32, #tpu.memory_space<vmem>>, vector<1x128xf32>
    %cst_30 = arith.constant 0.000000e+00 : f32
    %70 = vector.broadcast %cst_30 : f32 to vector<1x128xf32>
    %71 = arith.cmpf one, %69, %70 : vector<1x128xf32>
    %cst_31 = arith.constant 0.000000e+00 : f32
    %72 = vector.shape_cast %71 : vector<1x128xi1> to vector<1x128xi1>
    %73 = vector.broadcast %72 : vector<1x128xi1> to vector<8x128xi1>
    %74 = vector.broadcast %cst_31 : f32 to vector<8x128xf32>
    %75 = arith.select %73, %68, %74 : vector<8x128xi1>, vector<8x128xf32>
    %76 = vector.extract_strided_slice %11 {offsets = [0, 10], sizes = [8, 128], strides = [1, 1]} : vector<8x170xf32> to vector<8x128xf32>
    %c8 = arith.constant 8 : index
    %c0_32 = arith.constant 0 : index
    %77 = vector.load %arg6[%c8, %c0_32] : memref<32x128xf32, #tpu.memory_space<vmem>>, vector<1x128xf32>
    %cst_33 = arith.constant 0.000000e+00 : f32
    %78 = vector.broadcast %cst_33 : f32 to vector<1x128xf32>
    %79 = arith.cmpf one, %77, %78 : vector<1x128xf32>
    %cst_34 = arith.constant 0.000000e+00 : f32
    %80 = vector.shape_cast %79 : vector<1x128xi1> to vector<1x128xi1>
    %81 = vector.broadcast %80 : vector<1x128xi1> to vector<8x128xi1>
    %82 = vector.broadcast %cst_34 : f32 to vector<8x128xf32>
    %83 = arith.select %81, %76, %82 : vector<8x128xi1>, vector<8x128xf32>
    %84 = vector.extract_strided_slice %11 {offsets = [0, 16], sizes = [8, 128], strides = [1, 1]} : vector<8x170xf32> to vector<8x128xf32>
    %c9 = arith.constant 9 : index
    %c0_35 = arith.constant 0 : index
    %85 = vector.load %arg6[%c9, %c0_35] : memref<32x128xf32, #tpu.memory_space<vmem>>, vector<1x128xf32>
    %cst_36 = arith.constant 0.000000e+00 : f32
    %86 = vector.broadcast %cst_36 : f32 to vector<1x128xf32>
    %87 = arith.cmpf one, %85, %86 : vector<1x128xf32>
    %cst_37 = arith.constant 0.000000e+00 : f32
    %88 = vector.shape_cast %87 : vector<1x128xi1> to vector<1x128xi1>
    %89 = vector.broadcast %88 : vector<1x128xi1> to vector<8x128xi1>
    %90 = vector.broadcast %cst_37 : f32 to vector<8x128xf32>
    %91 = arith.select %89, %84, %90 : vector<8x128xi1>, vector<8x128xf32>
    %92 = vector.extract_strided_slice %11 {offsets = [0, 17], sizes = [8, 128], strides = [1, 1]} : vector<8x170xf32> to vector<8x128xf32>
    %c10 = arith.constant 10 : index
    %c0_38 = arith.constant 0 : index
    %93 = vector.load %arg6[%c10, %c0_38] : memref<32x128xf32, #tpu.memory_space<vmem>>, vector<1x128xf32>
    %cst_39 = arith.constant 0.000000e+00 : f32
    %94 = vector.broadcast %cst_39 : f32 to vector<1x128xf32>
    %95 = arith.cmpf one, %93, %94 : vector<1x128xf32>
    %cst_40 = arith.constant 0.000000e+00 : f32
    %96 = vector.shape_cast %95 : vector<1x128xi1> to vector<1x128xi1>
    %97 = vector.broadcast %96 : vector<1x128xi1> to vector<8x128xi1>
    %98 = vector.broadcast %cst_40 : f32 to vector<8x128xf32>
    %99 = arith.select %97, %92, %98 : vector<8x128xi1>, vector<8x128xf32>
    %100 = vector.extract_strided_slice %11 {offsets = [0, 18], sizes = [8, 128], strides = [1, 1]} : vector<8x170xf32> to vector<8x128xf32>
    %c11 = arith.constant 11 : index
    %c0_41 = arith.constant 0 : index
    %101 = vector.load %arg6[%c11, %c0_41] : memref<32x128xf32, #tpu.memory_space<vmem>>, vector<1x128xf32>
    %cst_42 = arith.constant 0.000000e+00 : f32
    %102 = vector.broadcast %cst_42 : f32 to vector<1x128xf32>
    %103 = arith.cmpf one, %101, %102 : vector<1x128xf32>
    %cst_43 = arith.constant 0.000000e+00 : f32
    %104 = vector.shape_cast %103 : vector<1x128xi1> to vector<1x128xi1>
    %105 = vector.broadcast %104 : vector<1x128xi1> to vector<8x128xi1>
    %106 = vector.broadcast %cst_43 : f32 to vector<8x128xf32>
    %107 = arith.select %105, %100, %106 : vector<8x128xi1>, vector<8x128xf32>
    %108 = vector.extract_strided_slice %11 {offsets = [0, 20], sizes = [8, 128], strides = [1, 1]} : vector<8x170xf32> to vector<8x128xf32>
    %c12 = arith.constant 12 : index
    %c0_44 = arith.constant 0 : index
    %109 = vector.load %arg6[%c12, %c0_44] : memref<32x128xf32, #tpu.memory_space<vmem>>, vector<1x128xf32>
    %cst_45 = arith.constant 0.000000e+00 : f32
    %110 = vector.broadcast %cst_45 : f32 to vector<1x128xf32>
    %111 = arith.cmpf one, %109, %110 : vector<1x128xf32>
    %cst_46 = arith.constant 0.000000e+00 : f32
    %112 = vector.shape_cast %111 : vector<1x128xi1> to vector<1x128xi1>
    %113 = vector.broadcast %112 : vector<1x128xi1> to vector<8x128xi1>
    %114 = vector.broadcast %cst_46 : f32 to vector<8x128xf32>
    %115 = arith.select %113, %108, %114 : vector<8x128xi1>, vector<8x128xf32>
    %116 = vector.extract_strided_slice %11 {offsets = [0, 21], sizes = [8, 128], strides = [1, 1]} : vector<8x170xf32> to vector<8x128xf32>
    %117 = vector.extract_strided_slice %11 {offsets = [0, 22], sizes = [8, 128], strides = [1, 1]} : vector<8x170xf32> to vector<8x128xf32>
    %c14 = arith.constant 14 : index
    %c0_47 = arith.constant 0 : index
    %118 = vector.load %arg6[%c14, %c0_47] : memref<32x128xf32, #tpu.memory_space<vmem>>, vector<1x128xf32>
    %cst_48 = arith.constant 0.000000e+00 : f32
    %119 = vector.broadcast %cst_48 : f32 to vector<1x128xf32>
    %120 = arith.cmpf one, %118, %119 : vector<1x128xf32>
    %cst_49 = arith.constant 0.000000e+00 : f32
    %121 = vector.shape_cast %120 : vector<1x128xi1> to vector<1x128xi1>
    %122 = vector.broadcast %121 : vector<1x128xi1> to vector<8x128xi1>
    %123 = vector.broadcast %cst_49 : f32 to vector<8x128xf32>
    %124 = arith.select %122, %117, %123 : vector<8x128xi1>, vector<8x128xf32>
    %125 = vector.extract_strided_slice %11 {offsets = [0, 24], sizes = [8, 128], strides = [1, 1]} : vector<8x170xf32> to vector<8x128xf32>
    %c15 = arith.constant 15 : index
    %c0_50 = arith.constant 0 : index
    %126 = vector.load %arg6[%c15, %c0_50] : memref<32x128xf32, #tpu.memory_space<vmem>>, vector<1x128xf32>
    %cst_51 = arith.constant 0.000000e+00 : f32
    %127 = vector.broadcast %cst_51 : f32 to vector<1x128xf32>
    %128 = arith.cmpf one, %126, %127 : vector<1x128xf32>
    %cst_52 = arith.constant 0.000000e+00 : f32
    %129 = vector.shape_cast %128 : vector<1x128xi1> to vector<1x128xi1>
    %130 = vector.broadcast %129 : vector<1x128xi1> to vector<8x128xi1>
    %131 = vector.broadcast %cst_52 : f32 to vector<8x128xf32>
    %132 = arith.select %130, %125, %131 : vector<8x128xi1>, vector<8x128xf32>
    %133 = vector.extract_strided_slice %11 {offsets = [0, 25], sizes = [8, 128], strides = [1, 1]} : vector<8x170xf32> to vector<8x128xf32>
    %c16 = arith.constant 16 : index
    %c0_53 = arith.constant 0 : index
    %134 = vector.load %arg6[%c16, %c0_53] : memref<32x128xf32, #tpu.memory_space<vmem>>, vector<1x128xf32>
    %cst_54 = arith.constant 0.000000e+00 : f32
    %135 = vector.broadcast %cst_54 : f32 to vector<1x128xf32>
    %136 = arith.cmpf one, %134, %135 : vector<1x128xf32>
    %cst_55 = arith.constant 0.000000e+00 : f32
    %137 = vector.shape_cast %136 : vector<1x128xi1> to vector<1x128xi1>
    %138 = vector.broadcast %137 : vector<1x128xi1> to vector<8x128xi1>
    %139 = vector.broadcast %cst_55 : f32 to vector<8x128xf32>
    %140 = arith.select %138, %133, %139 : vector<8x128xi1>, vector<8x128xf32>
    %141 = vector.extract_strided_slice %11 {offsets = [0, 26], sizes = [8, 128], strides = [1, 1]} : vector<8x170xf32> to vector<8x128xf32>
    %c17 = arith.constant 17 : index
    %c0_56 = arith.constant 0 : index
    %142 = vector.load %arg6[%c17, %c0_56] : memref<32x128xf32, #tpu.memory_space<vmem>>, vector<1x128xf32>
    %cst_57 = arith.constant 0.000000e+00 : f32
    %143 = vector.broadcast %cst_57 : f32 to vector<1x128xf32>
    %144 = arith.cmpf one, %142, %143 : vector<1x128xf32>
    %cst_58 = arith.constant 0.000000e+00 : f32
    %145 = vector.shape_cast %144 : vector<1x128xi1> to vector<1x128xi1>
    %146 = vector.broadcast %145 : vector<1x128xi1> to vector<8x128xi1>
    %147 = vector.broadcast %cst_58 : f32 to vector<8x128xf32>
    %148 = arith.select %146, %141, %147 : vector<8x128xi1>, vector<8x128xf32>
    %149 = vector.extract_strided_slice %11 {offsets = [0, 32], sizes = [8, 128], strides = [1, 1]} : vector<8x170xf32> to vector<8x128xf32>
    %c18 = arith.constant 18 : index
    %c0_59 = arith.constant 0 : index
    %150 = vector.load %arg6[%c18, %c0_59] : memref<32x128xf32, #tpu.memory_space<vmem>>, vector<1x128xf32>
    %cst_60 = arith.constant 0.000000e+00 : f32
    %151 = vector.broadcast %cst_60 : f32 to vector<1x128xf32>
    %152 = arith.cmpf one, %150, %151 : vector<1x128xf32>
    %cst_61 = arith.constant 0.000000e+00 : f32
    %153 = vector.shape_cast %152 : vector<1x128xi1> to vector<1x128xi1>
    %154 = vector.broadcast %153 : vector<1x128xi1> to vector<8x128xi1>
    %155 = vector.broadcast %cst_61 : f32 to vector<8x128xf32>
    %156 = arith.select %154, %149, %155 : vector<8x128xi1>, vector<8x128xf32>
    %157 = vector.extract_strided_slice %11 {offsets = [0, 33], sizes = [8, 128], strides = [1, 1]} : vector<8x170xf32> to vector<8x128xf32>
    %c19 = arith.constant 19 : index
    %c0_62 = arith.constant 0 : index
    %158 = vector.load %arg6[%c19, %c0_62] : memref<32x128xf32, #tpu.memory_space<vmem>>, vector<1x128xf32>
    %cst_63 = arith.constant 0.000000e+00 : f32
    %159 = vector.broadcast %cst_63 : f32 to vector<1x128xf32>
    %160 = arith.cmpf one, %158, %159 : vector<1x128xf32>
    %cst_64 = arith.constant 0.000000e+00 : f32
    %161 = vector.shape_cast %160 : vector<1x128xi1> to vector<1x128xi1>
    %162 = vector.broadcast %161 : vector<1x128xi1> to vector<8x128xi1>
    %163 = vector.broadcast %cst_64 : f32 to vector<8x128xf32>
    %164 = arith.select %162, %157, %163 : vector<8x128xi1>, vector<8x128xf32>
    %165 = vector.extract_strided_slice %11 {offsets = [0, 34], sizes = [8, 128], strides = [1, 1]} : vector<8x170xf32> to vector<8x128xf32>
    %c20 = arith.constant 20 : index
    %c0_65 = arith.constant 0 : index
    %166 = vector.load %arg6[%c20, %c0_65] : memref<32x128xf32, #tpu.memory_space<vmem>>, vector<1x128xf32>
    %cst_66 = arith.constant 0.000000e+00 : f32
    %167 = vector.broadcast %cst_66 : f32 to vector<1x128xf32>
    %168 = arith.cmpf one, %166, %167 : vector<1x128xf32>
    %cst_67 = arith.constant 0.000000e+00 : f32
    %169 = vector.shape_cast %168 : vector<1x128xi1> to vector<1x128xi1>
    %170 = vector.broadcast %169 : vector<1x128xi1> to vector<8x128xi1>
    %171 = vector.broadcast %cst_67 : f32 to vector<8x128xf32>
    %172 = arith.select %170, %165, %171 : vector<8x128xi1>, vector<8x128xf32>
    %173 = vector.extract_strided_slice %11 {offsets = [0, 36], sizes = [8, 128], strides = [1, 1]} : vector<8x170xf32> to vector<8x128xf32>
    %c21 = arith.constant 21 : index
    %c0_68 = arith.constant 0 : index
    %174 = vector.load %arg6[%c21, %c0_68] : memref<32x128xf32, #tpu.memory_space<vmem>>, vector<1x128xf32>
    %cst_69 = arith.constant 0.000000e+00 : f32
    %175 = vector.broadcast %cst_69 : f32 to vector<1x128xf32>
    %176 = arith.cmpf one, %174, %175 : vector<1x128xf32>
    %cst_70 = arith.constant 0.000000e+00 : f32
    %177 = vector.shape_cast %176 : vector<1x128xi1> to vector<1x128xi1>
    %178 = vector.broadcast %177 : vector<1x128xi1> to vector<8x128xi1>
    %179 = vector.broadcast %cst_70 : f32 to vector<8x128xf32>
    %180 = arith.select %178, %173, %179 : vector<8x128xi1>, vector<8x128xf32>
    %181 = vector.extract_strided_slice %11 {offsets = [0, 37], sizes = [8, 128], strides = [1, 1]} : vector<8x170xf32> to vector<8x128xf32>
    %c22 = arith.constant 22 : index
    %c0_71 = arith.constant 0 : index
    %182 = vector.load %arg6[%c22, %c0_71] : memref<32x128xf32, #tpu.memory_space<vmem>>, vector<1x128xf32>
    %cst_72 = arith.constant 0.000000e+00 : f32
    %183 = vector.broadcast %cst_72 : f32 to vector<1x128xf32>
    %184 = arith.cmpf one, %182, %183 : vector<1x128xf32>
    %cst_73 = arith.constant 0.000000e+00 : f32
    %185 = vector.shape_cast %184 : vector<1x128xi1> to vector<1x128xi1>
    %186 = vector.broadcast %185 : vector<1x128xi1> to vector<8x128xi1>
    %187 = vector.broadcast %cst_73 : f32 to vector<8x128xf32>
    %188 = arith.select %186, %181, %187 : vector<8x128xi1>, vector<8x128xf32>
    %189 = vector.extract_strided_slice %11 {offsets = [0, 38], sizes = [8, 128], strides = [1, 1]} : vector<8x170xf32> to vector<8x128xf32>
    %c23 = arith.constant 23 : index
    %c0_74 = arith.constant 0 : index
    %190 = vector.load %arg6[%c23, %c0_74] : memref<32x128xf32, #tpu.memory_space<vmem>>, vector<1x128xf32>
    %cst_75 = arith.constant 0.000000e+00 : f32
    %191 = vector.broadcast %cst_75 : f32 to vector<1x128xf32>
    %192 = arith.cmpf one, %190, %191 : vector<1x128xf32>
    %cst_76 = arith.constant 0.000000e+00 : f32
    %193 = vector.shape_cast %192 : vector<1x128xi1> to vector<1x128xi1>
    %194 = vector.broadcast %193 : vector<1x128xi1> to vector<8x128xi1>
    %195 = vector.broadcast %cst_76 : f32 to vector<8x128xf32>
    %196 = arith.select %194, %189, %195 : vector<8x128xi1>, vector<8x128xf32>
    %197 = vector.extract_strided_slice %11 {offsets = [0, 40], sizes = [8, 128], strides = [1, 1]} : vector<8x170xf32> to vector<8x128xf32>
    %c24 = arith.constant 24 : index
    %c0_77 = arith.constant 0 : index
    %198 = vector.load %arg6[%c24, %c0_77] : memref<32x128xf32, #tpu.memory_space<vmem>>, vector<1x128xf32>
    %cst_78 = arith.constant 0.000000e+00 : f32
    %199 = vector.broadcast %cst_78 : f32 to vector<1x128xf32>
    %200 = arith.cmpf one, %198, %199 : vector<1x128xf32>
    %cst_79 = arith.constant 0.000000e+00 : f32
    %201 = vector.shape_cast %200 : vector<1x128xi1> to vector<1x128xi1>
    %202 = vector.broadcast %201 : vector<1x128xi1> to vector<8x128xi1>
    %203 = vector.broadcast %cst_79 : f32 to vector<8x128xf32>
    %204 = arith.select %202, %197, %203 : vector<8x128xi1>, vector<8x128xf32>
    %205 = vector.extract_strided_slice %11 {offsets = [0, 41], sizes = [8, 128], strides = [1, 1]} : vector<8x170xf32> to vector<8x128xf32>
    %c25 = arith.constant 25 : index
    %c0_80 = arith.constant 0 : index
    %206 = vector.load %arg6[%c25, %c0_80] : memref<32x128xf32, #tpu.memory_space<vmem>>, vector<1x128xf32>
    %cst_81 = arith.constant 0.000000e+00 : f32
    %207 = vector.broadcast %cst_81 : f32 to vector<1x128xf32>
    %208 = arith.cmpf one, %206, %207 : vector<1x128xf32>
    %cst_82 = arith.constant 0.000000e+00 : f32
    %209 = vector.shape_cast %208 : vector<1x128xi1> to vector<1x128xi1>
    %210 = vector.broadcast %209 : vector<1x128xi1> to vector<8x128xi1>
    %211 = vector.broadcast %cst_82 : f32 to vector<8x128xf32>
    %212 = arith.select %210, %205, %211 : vector<8x128xi1>, vector<8x128xf32>
    %213 = vector.extract_strided_slice %11 {offsets = [0, 42], sizes = [8, 128], strides = [1, 1]} : vector<8x170xf32> to vector<8x128xf32>
    %c26 = arith.constant 26 : index
    %c0_83 = arith.constant 0 : index
    %214 = vector.load %arg6[%c26, %c0_83] : memref<32x128xf32, #tpu.memory_space<vmem>>, vector<1x128xf32>
    %cst_84 = arith.constant 0.000000e+00 : f32
    %215 = vector.broadcast %cst_84 : f32 to vector<1x128xf32>
    %216 = arith.cmpf one, %214, %215 : vector<1x128xf32>
    %cst_85 = arith.constant 0.000000e+00 : f32
    %217 = vector.shape_cast %216 : vector<1x128xi1> to vector<1x128xi1>
    %218 = vector.broadcast %217 : vector<1x128xi1> to vector<8x128xi1>
    %219 = vector.broadcast %cst_85 : f32 to vector<8x128xf32>
    %220 = arith.select %218, %213, %219 : vector<8x128xi1>, vector<8x128xf32>
    %221 = tpu.concatenate %19, %27, %35, %43, %51, %59, %67, %75, %83, %91, %99, %107, %115, %116, %124, %132 in 0 : vector<8x128xf32>, vector<8x128xf32>, vector<8x128xf32>, vector<8x128xf32>, vector<8x128xf32>, vector<8x128xf32>, vector<8x128xf32>, vector<8x128xf32>, vector<8x128xf32>, vector<8x128xf32>, vector<8x128xf32>, vector<8x128xf32>, vector<8x128xf32>, vector<8x128xf32>, vector<8x128xf32>, vector<8x128xf32> -> vector<128x128xf32>
    %222 = tpu.concatenate %140, %148, %156, %164, %172, %180, %188, %196, %204, %212, %220 in 0 : vector<8x128xf32>, vector<8x128xf32>, vector<8x128xf32>, vector<8x128xf32>, vector<8x128xf32>, vector<8x128xf32>, vector<8x128xf32>, vector<8x128xf32>, vector<8x128xf32>, vector<8x128xf32>, vector<8x128xf32> -> vector<88x128xf32>
    %223 = tpu.concatenate %221, %222 in 0 : vector<128x128xf32>, vector<88x128xf32> -> vector<216x128xf32>
    %c0_86 = arith.constant 0 : index
    %c0_87 = arith.constant 0 : index
    %224 = vector.load %arg4[%c0_86, %c0_87] : memref<8x216xf32, #tpu.memory_space<vmem>>, vector<8x216xf32>
    %cst_88 = arith.constant dense<0.000000e+00> : vector<8x128xf32>
    %225 = tpu.matmul %224, %223, %cst_88 {dimension_numbers = #tpu.dot_dimension_numbers<[1], [0], [0], [1], [0, 0, 1, 1], [], []>} : vector<8x216xf32>, vector<216x128xf32>, vector<8x128xf32> -> vector<8x128xf32>
    %c0_89 = arith.constant 0 : index
    %c0_90 = arith.constant 0 : index
    %226 = vector.load %arg5[%c0_89, %c0_90] : memref<8x1xf32, #tpu.memory_space<vmem>>, vector<8x1xf32>
    %227 = vector.broadcast %226 : vector<8x1xf32> to vector<8x128xf32>
    %228 = arith.addf %225, %227 : vector<8x128xf32>
    %cst_91 = arith.constant 0.000000e+00 : f32
    %229 = vector.broadcast %cst_91 : f32 to vector<8x128xf32>
    %230 = arith.maximumf %228, %229 : vector<8x128xf32>
    %231 = arith.addf %230, %9 : vector<8x128xf32>
    %c0_92 = arith.constant 0 : index
    %c0_93 = arith.constant 0 : index
    %232 = vector.load %arg7[%c0_92, %c0_93] : memref<8x128xf32, #tpu.memory_space<vmem>>, vector<8x128xf32>
    tpu.vector_store %arg7[%c0_92, %c0_93], %231 {strides = array<i32>} : memref<8x128xf32, #tpu.memory_space<vmem>>, vector<8x128xf32>,
    return
  }
  func.func @transform_0(%arg0: i32) -> (i32, i32) {
    %c0_i32 = arith.constant 0 : i32
    %c0_i32_0 = arith.constant 0 : i32
    return %c0_i32, %arg0 : i32, i32
  }
  func.func @transform_1(%arg0: i32) -> (i32, i32) {
    %c0_i32 = arith.constant 0 : i32
    %c0_i32_0 = arith.constant 0 : i32
    %c0_i32_1 = arith.constant 0 : i32
    return %c0_i32, %c0_i32_0 : i32, i32
  }
  func.func @transform_2(%arg0: i32) -> (i32, i32) {
    %c0_i32 = arith.constant 0 : i32
    %c0_i32_0 = arith.constant 0 : i32
    %c0_i32_1 = arith.constant 0 : i32
    return %c0_i32, %c0_i32_0 : i32, i32
  }
  func.func @transform_3(%arg0: i32) -> (i32, i32) {
    %c0_i32 = arith.constant 0 : i32
    %c0_i32_0 = arith.constant 0 : i32
    %c0_i32_1 = arith.constant 0 : i32
    return %c0_i32, %c0_i32_0 : i32, i32
  }
  func.func @transform_4(%arg0: i32) -> (i32, i32) {
    %c0_i32 = arith.constant 0 : i32
    %c0_i32_0 = arith.constant 0 : i32
    %c0_i32_1 = arith.constant 0 : i32
    return %c0_i32, %c0_i32_0 : i32, i32
  }
  func.func @transform_5(%arg0: i32) -> (i32, i32) {
    %c0_i32 = arith.constant 0 : i32
    %c0_i32_0 = arith.constant 0 : i32
    %c0_i32_1 = arith.constant 0 : i32
    return %c0_i32, %c0_i32_0 : i32, i32
  }
  func.func @transform_6(%arg0: i32) -> (i32, i32) {
    %c0_i32 = arith.constant 0 : i32
    %c0_i32_0 = arith.constant 0 : i32
    return %c0_i32, %arg0 : i32, i32
  }
}

</mosaic_0001>

<bundles_post_ra>
// kernel: double_residual_conv.1
= control target key start
LH: loop header
LB: loop body
LE: loop exit
PB: predicated region body
PF: predicated region fallthrough
CT: control target
= control target key end

     0   :  { %v941_v0 = vmov 0.0   ;;  %vm942_vm0 = vmmov 0   ;;  %v943_v2 = vmov 0   ;;  %vm102_vm1 = vcmask 1045504   ;;  %s947_s15 = smov 127   ;;  %s948_s16 = smov 122   ;;  %s1414_s0 = inlined_call_operand.vmem [shape: bf16[108,128], index: 0, kind: input, shape index: {}]   ;;  %s1415_s2 = inlined_call_operand.vmem [shape: f32[16,1], index: 2, kind: input, shape index: {}]   ;;  %s1416_s1 = inlined_call_operand.vmem [shape: bf16[16,108], index: 1, kind: input, shape index: {}]   ;;  %s1417_s3 = inlined_call_operand.vmem [shape: f32[8,216], index: 3, kind: input, shape index: {}]   ;;  %s1418_s4 = inlined_call_operand.vmem [shape: f32[8,1], index: 4, kind: input, shape index: {}]   ;;  %s1419_s5 = inlined_call_operand.vmem [shape: f32[32,128], index: 5, kind: input, shape index: {}]   ;;  %s1420_s6 = inlined_call_operand.vmem [shape: f32[8,128], index: 6, kind: output, shape index: {}]  }
   0x1   :  { %704 = vmatprep.subr.bf16.mxu0 %v941_v0  ;;  %v933_v1 = vld [vmem:[%s1414_s0] sm:$0xff]   ;;  %718 = vmatprep.mubr.msk.bf16.mxu0 %vm942_vm0, %v941_v0  ;;  %v934_v3 = vld [vmem:[%s1414_s0 + $0x8] sm:$0xff]   ;;  %v935_v4 = vld [vmem:[%s1414_s0 + $0x10] sm:$0xff]   ;;  %vm98_vm2 = vcmask 883712   ;;  %vm152_vm3 = vcmask 171008   ;;  %v945_v19 = vmov 0.0|0.0   ;;  %v158_v27 = vlaneseq }
   0x2   :  { %806 = vset.pattern.permute.xlu0 %v943_v2  ;;  %932 = vset.pattern.permute.xlu1 %v943_v2  ;;  %v40_v5 = vld [vmem:[%s1415_s2] sm:$0xff]  ;;  %v936_v6 = vld [vmem:[%s1414_s0 + $0x18] sm:$0xff]   ;;  %v938_v8 = vld [vmem:[%s1414_s0 + $0x28] sm:$0xff]   ;;  %s949_s17 = smov 126   ;;  %s950_s18 = smov 119   ;;  %vm529_vm4 = vcmask 719872  }
   0x3   :  { %705 = vmatpush3.bf16.msra.mxu0 %v933_v1  ;;  %44 = vperm.xlu0 %806, %v40_v5   ;;  %v937_v7 = vld [vmem:[%s1414_s0 + $0x20] sm:$0xff]   ;;  %v939_v9 = vld [vmem:[%s1414_s0 + $0x30] sm:$0x3f]   ;;  %s944_s0 = smov 21   ;;  %s951_s19 = smov 123   ;;  %v573_v24 = vld [vmem:[%s1417_s3 + $0x8] sm:$0xff] }
   0x4   :  { %706 = vmatprep.subr.bf16.mxu0 %v941_v0  ;;  %v104_v10 = vsel %vm102_vm1, %v939_v9, 0  ;;  %v940_v11 = vld [vmem:[%s1416_s1] sm:$0xff]   ;;  %722 = vmatprep.subr.bf16.mxu1 %v945_v19  ;;  %s946_s1 = smov 124   ;;  %s952_s20 = smov 112   ;;  %v41_v25 = vld [vmem:[%s1415_s2 + $0x8] sm:$0xff]  ;;  %v159_v31 = vshrl.u32 %v158_v27, 7 }
   0x5   :  { %s953_s21 = smov 120   ;;  %s954_s22 = smov 110   ;;  %695 = vmatprep.mubr.msk.f32.mxu1 %vm529_vm4, %v573_v24  ;;  %v574_v26 = vld [vmem:[%s1418_s4] sm:$0xff]  ;;  %vm210_vm11 = vcmask 1014784   ;;  %v278_v47 = vld [vmem:[%s1419_s5 + $0x8] sm:$0x1] }
   0x6   :  { %s955_s23 = smov 118   ;;  %s956_s24 = smov 107   ;;  %v155_v28 = vld [vmem:[%s1419_s5] sm:$0x1]  ;;  %v164_v29 = vld [vmem:[%s1419_s5 + $0x1] sm:$0x1] }
   0x7   :  { %707 = vmatpush3.bf16.msra.mxu0 %v934_v3  ;;  %s957_s25 = smov 111   ;;  %s958_s26 = smov 104   ;;  %v182_v30 = vld [vmem:[%s1419_s5 + $0x2] sm:$0x1]  ;;  %v198_v32 = vld [vmem:[%s1419_s5 + $0x3] sm:$0x1] }
   0x8   :  { %708 = vmatprep.subr.bf16.mxu0 %v941_v0  ;;  %s959_s27 = smov 108   ;;  %s960_s28 = smov 102   ;;  %vm156_vm5 = vcmp.ne.f32.partialorder %v155_v28, 0.0  ;;  %vm165_vm6 = vcmp.ne.f32.partialorder %v164_v29, 0.0  ;;  %vm183_vm7 = vcmp.ne.f32.partialorder %v182_v30, 0.0  ;;  %vm199_vm8 = vcmp.ne.f32.partialorder %v198_v32, 0.0 }
   0x9   :  { %s961_s29 = smov 106   ;;  %s962_s30 = smov 95   ;;  %v1075_v33 = vsub.s32 0, %v159_v31  ;;  %v157_v34 = vsel %vm156_vm5, 1, %v943_v2  ;;  %v166_v35 = vsel %vm165_vm6, 1, %v943_v2  ;;  %v184_v36 = vsel %vm183_vm7, 1, %v943_v2 }
   0xa   :  { %s963_s7 = smov 103   ;;  %s964_s8 = smov 92   ;;  %v214_v37 = vld [vmem:[%s1419_s5 + $0x4] sm:$0x1]  ;;  %v200_v38 = vsel %vm199_vm8, 1, %v943_v2  ;;  %vm242_vm12 = vcmask 998400  }
   0xb   :  { %709 = vmatpush3.bf16.msra.mxu0 %v935_v4  ;;  %s965_s9 = smov 96   ;;  %s966_s10 = smov 90   ;;  %v230_v39 = vld [vmem:[%s1419_s5 + $0x5] sm:$0x1]  ;;  %v161_v40 = vrot.slane %v157_v34, %v1075_v33  ;;  %v170_v41 = vrot.slane %v166_v35, %v1075_v33  ;;  %v188_v42 = vrot.slane %v184_v36, %v1075_v33  ;;  %vm215_vm9 = vcmp.ne.f32.partialorder %v214_v37, 0.0 }
   0xc   :  { %710 = vmatprep.subr.bf16.mxu0 %v941_v0  ;;  %s967_s11 = smov 94   ;;  %s968_s12 = smov 87   ;;  %v204_v43 = vrot.slane %v200_v38, %v1075_v33  ;;  %vm231_vm10 = vcmp.ne.f32.partialorder %v230_v39, 0.0  ;;  %v246_v44 = vld [vmem:[%s1419_s5 + $0x6] sm:$0x1]  ;;  %v216_v45 = vsel %vm215_vm9, 1, %v943_v2 }
   0xd   :  { %s969_s13 = smov 91   ;;  %v262_v46 = vld [vmem:[%s1419_s5 + $0x7] sm:$0x1]  ;;  %vm1101_vm13 = vcmp.eq.s32.totalorder %v161_v40, 1  ;;  %vm1105_vm14 = vcmp.eq.s32.totalorder %v170_v41, 1  ;;  %vm178_vm15 = vcmask 1039360   ;;  %v220_v58 = vrot.slane %v216_v45, %v1075_v33 }
   0xe   :  { %vm1109_vm0 = vcmp.eq.s32.totalorder %v188_v42, 1  ;;  %v294_v53 = vld [vmem:[%s1419_s5 + $0x9] sm:$0x1]  ;;  %vm1116_vm1 = vcmp.eq.s32.totalorder %v204_v43, 1  ;;  %v232_v57 = vsel %vm231_vm10, 1, %v943_v2  ;;  %vm263_vm5 = vcmp.ne.f32.partialorder %v262_v46, 0.0  ;;  %vm724_vm7 = vmpackc.low %vm1105_vm14, %vm1101_vm13 }
   0xf   :  { %711 = vmatpush3.bf16.msra.mxu0 %v936_v6  ;;  %vm279_vm6 = vcmp.ne.f32.partialorder %v278_v47, 0.0  ;;  %vm295_vm8 = vcmp.ne.f32.partialorder %v294_v53, 0.0  ;;  %vm194_vm9 = vcmask 1031168   ;;  %vm274_vm10 = vcmask 973824   ;;  %vm728_vm13 = vmpackc.low %vm1116_vm1, %vm1109_vm0  ;;  %v357_v35 = vld [vmem:[%s1419_s5 + $0xe] sm:$0x1] }
  0x10   :  { %712 = vmatprep.subr.bf16.mxu0 %v941_v0  ;;  %v236_v3 = vrot.slane %v232_v57, %v1075_v33  ;;  %vm1137_vm14 = vcmp.eq.s32.totalorder %v220_v58, 1  ;;  %v280_v9 = vsel %vm279_vm6, 1, %v943_v2  ;;  %vm258_vm0 = vcmask 982016   ;;  %v373_v52 = vld [vmem:[%s1419_s5 + $0xf] sm:$0x1] }
  0x11   :  { %v284_v28 = vrot.slane %v280_v9, %v1075_v33  ;;  %v453_v40 = vld [vmem:[%s1419_s5 + $0x14] sm:$0x1] }
  0x13   :  { %713 = vmatpush3.bf16.msra.mxu0 %v937_v7  ;;  %v264_v7 = vsel %vm263_vm5, 1, %v943_v2 }
  0x14   :  { %714 = vmatprep.subr.bf16.mxu0 %v941_v0 }
  0x17   :  { %715 = vmatpush3.bf16.msra.mxu0 %v938_v8 }
  0x18   :  { %716 = vmatprep.subr.bf16.mxu0 %v941_v0 }
  0x1b   :  { %717 = vmatpush3.bf16.msra.mxu0 %v104_v10  ;;  %v296_v10 = vsel %vm295_vm8, 1, %v943_v2 }
  0x1c   :  { %v300_v29 = vrot.slane %v296_v10, %v1075_v33 }
  0x1e   :  { %719 = vmatmul.mubr.msk.bf16.vlgmr.msra.gmra.mrb[0].mxu0 %vm98_vm2, %v940_v11 }
  0x82   :  { %v45_v12 = vpop.permute.xlu0 %44 }
  0xf1   :  { %v140_v13 = vpop.f32.mrb[0].mxu0 }
  0xf2   :  { %v141_v14 = vadd.f32 %v140_v13, %v45_v12  ;;  %v720_v15 = vpop.f32.mrb[1].mxu0 }
  0xf3   :  { %v1046_v16 = vpop.f32.mrb[2].mxu0  ;;  %v310_v15 = vld [vmem:[%s1419_s5 + $0xa] sm:$0x1] }
  0xf4   :  { %v147_v17 = vmax.f32 %v141_v14, 0.0  ;;  %v721_v18 = vpop.f32.mrb[3].mxu0  ;;  %vm311_vm5 = vcmp.ne.f32.partialorder %v310_v15, 0.0 }
  0xf5   :  { %v342_v18 = vld [vmem:[%s1419_s5 + $0xc] sm:$0x1]  ;;  %v312_v43 = vsel %vm311_vm5, 1, %v943_v2  ;;  %vm569_vm5 = vcmask 875520  }
  0xf6   :  { %149 = vrot.lane.b32.xlu0 %v147_v17, %s944_s0  ;;  %v326_v17 = vld [vmem:[%s1419_s5 + $0xb] sm:$0x1]  ;;  %v316_v56 = vrot.slane %v312_v43, %v1075_v33 }
  0xf7   :  { %vm327_vm6 = vcmp.ne.f32.partialorder %v326_v17, 0.0 }
 0x168   :  { %v150_v20 = vpop.permute.xlu0 %149 }
 0x169   :  { %v1049_v21 = vsel %vm152_vm3, 0.0, %v150_v20  ;;  %v154_v22 = vsel %vm152_vm3, %v150_v20, 0.0  ;;  %vm247_vm3 = vcmp.ne.f32.partialorder %v246_v44, 0.0  ;;  %v328_v44 = vsel %vm327_vm6, 1, %v943_v2 }
 0x16a   :  { %v817_v23 = vpack.i.bf16 %v154_v22, %v1049_v21  ;;  %v248_v6 = vsel %vm247_vm3, 1, %v943_v2  ;;  %vm306_vm3 = vcmask 916480   ;;  %v332_v57 = vrot.slane %v328_v44, %v1075_v33 }
 0x16b   :  { %v252_v24 = vrot.slane %v248_v6, %v1075_v33  ;;  %vm322_vm6 = vcmask 908288   ;;  %v421_v6 = vld [vmem:[%s1419_s5 + $0x12] sm:$0x1] }
 0x16c   :  { %818 = vrot.lane.b32.xlu0 %v817_v23, %s946_s1  ;;  %808 = vrot.lane.b32.xlu1 %v817_v23, %s947_s15  ;;  %s970_s1 = smov 86   ;;  %s971_s15 = smov 88  }
 0x170   :  { %828 = vrot.lane.b32.xlu0 %v817_v23, %s948_s16  ;;  %813 = vrot.lane.b32.xlu1 %v817_v23, %s949_s17 }
 0x174   :  { %838 = vrot.lane.b32.xlu0 %v817_v23, %s950_s18  ;;  %823 = vrot.lane.b32.xlu1 %v817_v23, %s951_s19 }
 0x178   :  { %848 = vrot.lane.b32.xlu0 %v817_v23, %s952_s20  ;;  %833 = vrot.lane.b32.xlu1 %v817_v23, %s953_s21 }
 0x17c   :  { %858 = vrot.lane.b32.xlu0 %v817_v23, %s954_s22  ;;  %843 = vrot.lane.b32.xlu1 %v817_v23, %s955_s23 }
 0x180   :  { %868 = vrot.lane.b32.xlu0 %v817_v23, %s956_s24  ;;  %853 = vrot.lane.b32.xlu1 %v817_v23, %s957_s25 }
 0x184   :  { %878 = vrot.lane.b32.xlu0 %v817_v23, %s958_s26  ;;  %863 = vrot.lane.b32.xlu1 %v817_v23, %s959_s27 }
 0x188   :  { %888 = vrot.lane.b32.xlu0 %v817_v23, %s960_s28  ;;  %873 = vrot.lane.b32.xlu1 %v817_v23, %s961_s29 }
 0x18c   :  { %898 = vrot.lane.b32.xlu0 %v817_v23, %s962_s30  ;;  %883 = vrot.lane.b32.xlu1 %v817_v23, %s963_s7 }
 0x190   :  { %908 = vrot.lane.b32.xlu0 %v817_v23, %s964_s8  ;;  %893 = vrot.lane.b32.xlu1 %v817_v23, %s965_s9 }
 0x194   :  { %918 = vrot.lane.b32.xlu0 %v817_v23, %s966_s10  ;;  %903 = vrot.lane.b32.xlu1 %v817_v23, %s967_s11 }
 0x198   :  { %928 = vrot.lane.b32.xlu0 %v817_v23, %s968_s12  ;;  %913 = vrot.lane.b32.xlu1 %v817_v23, %s969_s13 }
 0x19c   :  { %559 = vrot.lane.b32.xlu0 %v154_v22, %s970_s1  ;;  %923 = vrot.lane.b32.xlu1 %v817_v23, %s971_s15  ;;  %v437_v23 = vld [vmem:[%s1419_s5 + $0x13] sm:$0x1] }
 0x1a0   :  { %49 = vperm.xlu0 %806, %v41_v25   ;;  %557 = vrot.lane.b32.xlu1 %v1049_v21, %s970_s1  ;;  %v268_v25 = vrot.slane %v264_v7, %v1075_v33 }
 0x1a2   :  { %vm1184_vm1 = vcmp.eq.s32.totalorder %v268_v25, 1 }
 0x1a4   :  { %577 = vperm.xlu1 %932, %v574_v26  }
 0x1de   :  { %v819_v48 = vpop.permute.xlu0 %818  ;;  %v809_v49 = vpop.permute.xlu1 %808 }
 0x1df   :  { %v811_v54 = vunpack.i.h.bf16 %v809_v49  ;;  %v810_v55 = vunpack.i.l.bf16 %v809_v49  ;;  %v821_v59 = vunpack.i.h.bf16 %v819_v48  ;;  %v820_v60 = vunpack.i.l.bf16 %v819_v48 }
 0x1e1   :  { %v179_v61 = vsel %vm178_vm15, %v810_v55, %v811_v54  ;;  %vm226_vm15 = vcmask 1006592   ;;  %v211_v11 = vsel %vm210_vm11, %v820_v60, %v821_v59  ;;  %vm1157_vm11 = vcmp.eq.s32.totalorder %v236_v3, 1 }
 0x1e2   :  { %v829_v62 = vpop.permute.xlu0 %828  ;;  %v814_v63 = vpop.permute.xlu1 %813  ;;  %v723_v1 = vpack.c.bf16 %v179_v61, %v1049_v21  ;;  %vm732_vm8 = vmpackc.low %vm1157_vm11, %vm1137_vm14  ;;  %vm290_vm11 = vcmask 965632  }
 0x1e3   :  { %v816_v4 = vunpack.i.h.bf16 %v814_v63  ;;  %v815_v5 = vunpack.i.l.bf16 %v814_v63  ;;  %v831_v12 = vunpack.i.h.bf16 %v829_v62  ;;  %v830_v13 = vunpack.i.l.bf16 %v829_v62 }
 0x1e4   :  { %725 = vmatpush1.bf16.msk.msra.mxu1 %vm724_vm7, %v723_v1  ;;  %vm343_vm7 = vcmp.ne.f32.partialorder %v342_v18, 0.0 }
 0x1e5   :  { %v195_v14 = vsel %vm194_vm9, %v815_v5, %v816_v4  ;;  %726 = vmatprep.subr.bf16.mxu1 %v945_v19  ;;  %v243_v30 = vsel %vm242_vm12, %v830_v13, %v831_v12  ;;  %vm1180_vm12 = vcmp.eq.s32.totalorder %v252_v24, 1  ;;  %vm1192_vm9 = vcmp.eq.s32.totalorder %v284_v28, 1  ;;  %v389_v4 = vld [vmem:[%s1419_s5 + $0x10] sm:$0x1]  ;;  %v405_v5 = vld [vmem:[%s1419_s5 + $0x11] sm:$0x1] }
 0x1e6   :  { %v727_v20 = vpack.c.bf16 %v211_v11, %v195_v14  ;;  %v839_v21 = vpop.permute.xlu0 %838  ;;  %v824_v22 = vpop.permute.xlu1 %823  ;;  %v344_v47 = vsel %vm343_vm7, 1, %v943_v2  ;;  %vm736_vm14 = vmpackc.low %vm1184_vm1, %vm1180_vm12  ;;  %vm390_vm1 = vcmp.ne.f32.partialorder %v389_v4, 0.0 }
 0x1e7   :  { %v826_v26 = vunpack.i.h.bf16 %v824_v22  ;;  %v825_v27 = vunpack.i.l.bf16 %v824_v22  ;;  %v841_v31 = vunpack.i.h.bf16 %v839_v21  ;;  %v840_v32 = vunpack.i.l.bf16 %v839_v21 }
 0x1e8   :  { %729 = vmatpush1.bf16.msk.msra.mxu1 %vm728_vm13, %v727_v20  ;;  %vm358_vm13 = vcmp.ne.f32.partialorder %v357_v35, 0.0  ;;  %v348_v60 = vrot.slane %v344_v47, %v1075_v33 }
 0x1e9   :  { %v227_v34 = vsel %vm226_vm15, %v825_v27, %v826_v26  ;;  %730 = vmatprep.subr.bf16.mxu1 %v945_v19  ;;  %vm1196_vm15 = vcmp.eq.s32.totalorder %v300_v29, 1  ;;  %v275_v48 = vsel %vm274_vm10, %v840_v32, %v841_v31  ;;  %vm338_vm10 = vcmask 900096  }
 0x1ea   :  { %v731_v36 = vpack.c.bf16 %v243_v30, %v227_v34  ;;  %v849_v37 = vpop.permute.xlu0 %848  ;;  %v834_v38 = vpop.permute.xlu1 %833  ;;  %vm740_vm7 = vmpackc.low %vm1196_vm15, %vm1192_vm9  ;;  %v359_v61 = vsel %vm358_vm13, 1, %v943_v2  ;;  %vm1241_vm12 = vcmp.eq.s32.totalorder %v348_v60, 1  ;;  %vm406_vm13 = vcmp.ne.f32.partialorder %v405_v5, 0.0 }
 0x1eb   :  { %v836_v41 = vunpack.i.h.bf16 %v834_v38  ;;  %v835_v42 = vunpack.i.l.bf16 %v834_v38  ;;  %v851_v49 = vunpack.i.h.bf16 %v849_v37  ;;  %v850_v50 = vunpack.i.l.bf16 %v849_v37 }
 0x1ec   :  { %733 = vmatpush1.bf16.msk.msra.mxu1 %vm732_vm8, %v731_v36  ;;  %vm374_vm8 = vcmp.ne.f32.partialorder %v373_v52, 0.0  ;;  %v363_v17 = vrot.slane %v359_v61, %v1075_v33  ;;  %vm385_vm9 = vcmask 850944   ;;  %vm417_vm15 = vcmask 834560  }
 0x1ed   :  { %v259_v51 = vsel %vm258_vm0, %v835_v42, %v836_v41  ;;  %734 = vmatprep.subr.bf16.mxu1 %v945_v19  ;;  %v307_v62 = vsel %vm306_vm3, %v850_v50, %v851_v49  ;;  %vm1233_vm3 = vcmp.eq.s32.totalorder %v316_v56, 1  ;;  %vm1237_vm0 = vcmp.eq.s32.totalorder %v332_v57, 1  ;;  %v469_v41 = vld [vmem:[%s1419_s5 + $0x15] sm:$0x1]  ;;  %v485_v42 = vld [vmem:[%s1419_s5 + $0x16] sm:$0x1] }
 0x1ee   :  { %v735_v53 = vpack.c.bf16 %v275_v48, %v259_v51  ;;  %v859_v54 = vpop.permute.xlu0 %858  ;;  %v844_v55 = vpop.permute.xlu1 %843  ;;  %v375_v15 = vsel %vm374_vm8, 1, %v943_v2  ;;  %v391_v30 = vsel %vm390_vm1, 1, %v943_v2  ;;  %v407_v31 = vsel %vm406_vm13, 1, %v943_v2  ;;  %v501_v57 = vld [vmem:[%s1419_s5 + $0x17] sm:$0x1] }
 0x1ef   :  { %v846_v58 = vunpack.i.h.bf16 %v844_v55  ;;  %v845_v59 = vunpack.i.l.bf16 %v844_v55  ;;  %v861_v63 = vunpack.i.h.bf16 %v859_v54  ;;  %v860_v1 = vunpack.i.l.bf16 %v859_v54 }
 0x1f0   :  { %737 = vmatpush1.bf16.msk.msra.mxu1 %vm736_vm14, %v735_v53  ;;  %vm422_vm14 = vcmp.ne.f32.partialorder %v421_v6, 0.0  ;;  %v379_v27 = vrot.slane %v375_v15, %v1075_v33  ;;  %vm1274_vm8 = vcmp.eq.s32.totalorder %v363_v17, 1  ;;  %v395_v47 = vrot.slane %v391_v30, %v1075_v33 }
 0x1f1   :  { %v291_v3 = vsel %vm290_vm11, %v845_v59, %v846_v58  ;;  %738 = vmatprep.subr.bf16.mxu1 %v945_v19  ;;  %v339_v18 = vsel %vm338_vm10, %v860_v1, %v861_v63  ;;  %vm744_vm11 = vmpackc.low %vm1237_vm0, %vm1233_vm3  ;;  %vm369_vm10 = vcmask 867328   ;;  %v423_v35 = vsel %vm422_vm14, 1, %v943_v2 }
 0x1f2   :  { %v739_v7 = vpack.c.bf16 %v307_v62, %v291_v3  ;;  %v869_v8 = vpop.permute.xlu0 %868  ;;  %v854_v9 = vpop.permute.xlu1 %853  ;;  %vm438_vm3 = vcmp.ne.f32.partialorder %v437_v23, 0.0  ;;  %vm1292_vm0 = vcmp.eq.s32.totalorder %v379_v27, 1  ;;  %v411_v48 = vrot.slane %v407_v31, %v1075_v33 }
 0x1f3   :  { %v856_v12 = vunpack.i.h.bf16 %v854_v9  ;;  %v855_v13 = vunpack.i.l.bf16 %v854_v9  ;;  %v871_v20 = vunpack.i.h.bf16 %v869_v8  ;;  %v870_v21 = vunpack.i.l.bf16 %v869_v8  ;;  %vm752_vm14 = vmpackc.low %vm1292_vm0, %vm1274_vm8 }
 0x1f4   :  { %741 = vmatpush1.bf16.msk.msra.mxu1 %vm740_vm7, %v739_v7  ;;  %v439_v51 = vsel %vm438_vm3, 1, %v943_v2  ;;  %v427_v52 = vrot.slane %v423_v35, %v1075_v33  ;;  %vm470_vm1 = vcmp.ne.f32.partialorder %v469_v41, 0.0  ;;  %vm486_vm13 = vcmp.ne.f32.partialorder %v485_v42, 0.0  ;;  %v549_v42 = vld [vmem:[%s1419_s5 + $0x1a] sm:$0x1] }
 0x1f5   :  { %v323_v22 = vsel %vm322_vm6, %v855_v13, %v856_v12  ;;  %742 = vmatprep.subr.bf16.mxu1 %v945_v19  ;;  %vm972_vm6 = vmmov 1   ;;  %v570_v36 = vsel %vm569_vm5, %v870_v21, %v871_v20  ;;  %vm449_vm5 = vcmask 777216   ;;  %v517_v12 = vld [vmem:[%s1419_s5 + $0x18] sm:$0x1]  ;;  %v533_v13 = vld [vmem:[%s1419_s5 + $0x19] sm:$0x1] }
 0x1f6   :  { %v743_v24 = vpack.c.bf16 %v339_v18, %v323_v22  ;;  %v879_v25 = vpop.permute.xlu0 %878  ;;  %v864_v26 = vpop.permute.xlu1 %863  ;;  %vm1270_vm7 = vmpackc.low %vm972_vm6, %vm1241_vm12  ;;  %vm454_vm12 = vcmp.ne.f32.partialorder %v453_v40, 0.0  ;;  %v443_v63 = vrot.slane %v439_v51, %v1075_v33  ;;  %v471_v5 = vsel %vm470_vm1, 1, %v943_v2 }
 0x1f7   :  { %v866_v28 = vunpack.i.h.bf16 %v864_v26  ;;  %v865_v29 = vunpack.i.l.bf16 %v864_v26  ;;  %v881_v37 = vunpack.i.h.bf16 %v879_v25  ;;  %v880_v38 = vunpack.i.l.bf16 %v879_v25 }
 0x1f8   :  { %745 = vmatpush1.bf16.msk.msra.mxu1 %vm744_vm11, %v743_v24  ;;  %vm1313_vm11 = vcmp.eq.s32.totalorder %v395_v47, 1  ;;  %v455_v4 = vsel %vm454_vm12, 1, %v943_v2  ;;  %vm1326_vm6 = vcmp.eq.s32.totalorder %v427_v52, 1  ;;  %v487_v7 = vsel %vm486_vm13, 1, %v943_v2 }
 0x1f9   :  { %v354_v39 = vsel %vm98_vm2, %v865_v29, %v866_v28  ;;  %746 = vmatprep.subr.bf16.mxu1 %v945_v19  ;;  %vm401_vm2 = vcmask 842752   ;;  %v386_v53 = vsel %vm385_vm9, %v880_v38, %v881_v37  ;;  %vm1317_vm9 = vcmp.eq.s32.totalorder %v411_v48, 1 }
 0x1fa   :  { %v747_v43 = vpack.c.bf16 %v570_v36, %v354_v39  ;;  %v889_v44 = vpop.permute.xlu0 %888  ;;  %v874_v45 = vpop.permute.xlu1 %873  ;;  %vm756_vm8 = vmpackc.low %vm1317_vm9, %vm1313_vm11  ;;  %v459_v20 = vrot.slane %v455_v4, %v1075_v33  ;;  %v475_v21 = vrot.slane %v471_v5, %v1075_v33  ;;  %vm481_vm3 = vcmask 752640  }
 0x1fb   :  { %v876_v49 = vunpack.i.h.bf16 %v874_v45  ;;  %v875_v50 = vunpack.i.l.bf16 %v874_v45  ;;  %v891_v54 = vunpack.i.h.bf16 %v889_v44  ;;  %v890_v55 = vunpack.i.l.bf16 %v889_v44 }
 0x1fc   :  { %749 = vmatpush1.bf16.msk.msra.mxu1 %vm1270_vm7, %v747_v43  ;;  %vm502_vm7 = vcmp.ne.f32.partialorder %v501_v57, 0.0  ;;  %vm465_vm0 = vcmask 769024   ;;  %v491_v25 = vrot.slane %v487_v7, %v1075_v33  ;;  %vm534_vm12 = vcmp.ne.f32.partialorder %v533_v13, 0.0  ;;  %v572_v7 = vld [vmem:[%s1417_s3] sm:$0xff] }
 0x1fd   :  { %v370_v56 = vsel %vm369_vm10, %v875_v50, %v876_v49  ;;  %750 = vmatprep.subr.bf16.mxu1 %v945_v19  ;;  %vm433_vm10 = vcmask 785408   ;;  %v418_v8 = vsel %vm417_vm15, %v890_v55, %v891_v54  ;;  %vm1345_vm15 = vcmp.eq.s32.totalorder %v443_v63, 1 }
 0x1fe   :  { %v751_v58 = vpack.c.bf16 %v386_v53, %v370_v56  ;;  %v899_v59 = vpop.permute.xlu0 %898  ;;  %v884_v60 = vpop.permute.xlu1 %883  ;;  %v503_v24 = vsel %vm502_vm7, 1, %v943_v2  ;;  %vm760_vm1 = vmpackc.low %vm1345_vm15, %vm1326_vm6  ;;  %vm1361_vm13 = vcmp.eq.s32.totalorder %v459_v20, 1  ;;  %v535_v40 = vsel %vm534_vm12, 1, %v943_v2 }
 0x1ff   :  { %v886_v1 = vunpack.i.h.bf16 %v884_v60  ;;  %v885_v3 = vunpack.i.l.bf16 %v884_v60  ;;  %v901_v9 = vunpack.i.h.bf16 %v899_v59  ;;  %v900_v10 = vunpack.i.l.bf16 %v899_v59 }
 0x200   :  { %753 = vmatpush1.bf16.msk.msra.mxu1 %vm752_vm14, %v751_v58  ;;  %vm1365_vm14 = vcmp.eq.s32.totalorder %v475_v21, 1  ;;  %v507_v36 = vrot.slane %v503_v24, %v1075_v33  ;;  %vm497_vm11 = vcmask 744448   ;;  %vm1374_vm9 = vcmp.eq.s32.totalorder %v491_v25, 1 }
 0x201   :  { %v402_v11 = vsel %vm401_vm2, %v885_v3, %v886_v1  ;;  %754 = vmatprep.subr.bf16.mxu1 %v945_v19  ;;  %vm518_vm2 = vcmp.ne.f32.partialorder %v517_v12, 0.0  ;;  %v450_v26 = vsel %vm449_vm5, %v900_v10, %v901_v9  ;;  %vm513_vm5 = vcmask 736256  }
 0x202   :  { %v755_v14 = vpack.c.bf16 %v418_v8, %v402_v11  ;;  %v909_v15 = vpop.permute.xlu0 %908  ;;  %v894_v17 = vpop.permute.xlu1 %893  ;;  %v519_v39 = vsel %vm518_vm2, 1, %v943_v2  ;;  %vm1388_vm6 = vcmp.eq.s32.totalorder %v507_v36, 1  ;;  %v539_v52 = vrot.slane %v535_v40, %v1075_v33 }
 0x203   :  { %v896_v22 = vunpack.i.h.bf16 %v894_v17  ;;  %v895_v23 = vunpack.i.l.bf16 %v894_v17  ;;  %v911_v27 = vunpack.i.h.bf16 %v909_v15  ;;  %v910_v28 = vunpack.i.l.bf16 %v909_v15  ;;  %vm768_vm15 = vmpackc.low %vm1388_vm6, %vm1374_vm9 }
 0x204   :  { %757 = vmatpush1.bf16.msk.msra.mxu1 %vm756_vm8, %v755_v14  ;;  %v523_v51 = vrot.slane %v519_v39, %v1075_v33  ;;  %vm550_vm7 = vcmp.ne.f32.partialorder %v549_v42, 0.0  ;;  %vm545_vm8 = vcmask 711680   ;;  %vm561_vm12 = vcmask 703488  }
 0x205   :  { %v434_v29 = vsel %vm433_vm10, %v895_v23, %v896_v22  ;;  %758 = vmatprep.subr.bf16.mxu1 %v945_v19  ;;  %v482_v43 = vsel %vm481_vm3, %v910_v28, %v911_v27  ;;  %vm764_vm10 = vmpackc.low %vm1365_vm14, %vm1361_vm13  ;;  %v551_v61 = vsel %vm550_vm7, 1, %v943_v2 }
 0x206   :  { %v759_v30 = vpack.c.bf16 %v450_v26, %v434_v29  ;;  %v919_v31 = vpop.permute.xlu0 %918  ;;  %v904_v32 = vpop.permute.xlu1 %903  ;;  %vm524_vm3 = vcmp.eq.s32.totalorder %v523_v51, 1  ;;  %v555_v4 = vrot.slane %v551_v61, %v1075_v33 }
 0x207   :  { %v906_v37 = vunpack.i.h.bf16 %v904_v32  ;;  %v905_v38 = vunpack.i.l.bf16 %v904_v32  ;;  %v921_v44 = vunpack.i.h.bf16 %v919_v31  ;;  %v920_v45 = vunpack.i.l.bf16 %v919_v31 }
 0x208   :  { %761 = vmatpush1.bf16.msk.msra.mxu1 %vm760_vm1, %v759_v30  ;;  %vm556_vm1 = vcmp.eq.s32.totalorder %v555_v4, 1 }
 0x209   :  { %v466_v46 = vsel %vm465_vm0, %v905_v38, %v906_v37  ;;  %762 = vmatprep.subr.bf16.mxu1 %v945_v19  ;;  %v514_v55 = vsel %vm513_vm5, %v920_v45, %v921_v44  ;;  %vm540_vm0 = vcmp.eq.s32.totalorder %v539_v52, 1 }
 0x20a   :  { %v763_v47 = vpack.c.bf16 %v482_v43, %v466_v46  ;;  %v929_v48 = vpop.permute.xlu0 %928  ;;  %v914_v49 = vpop.permute.xlu1 %913  ;;  %vm772_vm2 = vmpackc.low %vm540_vm0, %vm524_vm3 }
 0x20b   :  { %v916_v53 = vunpack.i.h.bf16 %v914_v49  ;;  %v915_v54 = vunpack.i.l.bf16 %v914_v49  ;;  %v931_v56 = vunpack.i.h.bf16 %v929_v48  ;;  %v930_v57 = vunpack.i.l.bf16 %v929_v48 }
 0x20c   :  { %765 = vmatpush1.bf16.msk.msra.mxu1 %vm764_vm10, %v763_v47 }
 0x20d   :  { %v498_v58 = vsel %vm497_vm11, %v915_v54, %v916_v53  ;;  %766 = vmatprep.subr.bf16.mxu1 %v945_v19  ;;  %v546_v1 = vsel %vm545_vm8, %v930_v57, %v931_v56 }
 0x20e   :  { %v767_v59 = vpack.c.bf16 %v514_v55, %v498_v58  ;;  %v924_v60 = vpop.permute.xlu1 %923  ;;  %v560_v2 = vpop.permute.xlu0 %559 }
 0x20f   :  { %v926_v62 = vunpack.i.h.bf16 %v924_v60  ;;  %v925_v63 = vunpack.i.l.bf16 %v924_v60 }
 0x210   :  { %769 = vmatpush1.bf16.msk.msra.mxu1 %vm768_vm15, %v767_v59 }
 0x211   :  { %v530_v3 = vsel %vm529_vm4, %v925_v63, %v926_v62  ;;  %770 = vmatprep.subr.bf16.mxu1 %v945_v19 }
 0x212   :  { %v771_v5 = vpack.c.bf16 %v546_v1, %v530_v3  ;;  %v558_v6 = vpop.permute.xlu1 %557 }
 0x213   :  { %v562_v8 = vsel %vm561_vm12, %v558_v6, %v560_v2 }
 0x214   :  { %773 = vmatpush1.bf16.msk.msra.mxu1 %vm772_vm2, %v771_v5 }
 0x215   :  { %635 = vmatprep.subr.mxu1 %v941_v0 }
 0x218   :  { %694 = vmatpush1.msk.msra.mxu1 %vm556_vm1, %v562_v8 }
 0x219   :  { %648 = vmatmul.mubr.f32.vlgmr.msra.gmra.mrb[0].mxu1 %v572_v7 }
 0x21f   :  { %v50_v19 = vpop.permute.xlu0 %49 }
 0x220   :  { %v144_v12 = vadd.f32 %v1046_v16, %v50_v19 }
 0x223   :  { %v578_v9 = vpop.permute.xlu1 %577 }
 0x2ec   :  { %v649_v10 = vpop.f32.mrb[0].mxu1 }
 0x2ed   :  { %v650_v11 = vadd.f32 %v649_v10, %v578_v9  ;;  %v651_v33 = vpop.f32.mrb[1].mxu1 }
 0x2ef   :  { %v653_v13 = vmax.f32 %v650_v11, 0.0 }
 0x2f1   :  { %v654_v14 = vadd.f32 %v653_v13, %v144_v12 }
 0x2f3   :  { %655 = vst [vmem:[%s1420_s6] sm:$0xff] %v654_v14 }

</bundles_post_ra>
